<compile_context>
chip_gen: v5e
topology: v5e:2x2
jax: 0.10.0
libtpu: 0.0.40
codegen_flags: <defaults>
</compile_context>

<pallas_src>
import jax
import jax.numpy as jnp
from jax.experimental import pallas as pl
from jax.experimental.pallas import tpu as pltpu


def _round_up(a, b):
    return ((a + b - 1) // b) * b


def dqn_kernel(x_ref, w1_ref, b1_ref, w2_ref, b2_ref, w3_ref, b3_ref, o_ref):
    # x / W* are bf16; accumulate in f32 on the MXU, keep bias+ReLU in f32.
    h1 = jnp.dot(x_ref[...], w1_ref[...], preferred_element_type=jnp.float32)
    h1 = jnp.maximum(h1 + b1_ref[...], 0.0)
    h2 = jnp.dot(h1.astype(w2_ref.dtype), w2_ref[...],
                 preferred_element_type=jnp.float32)
    h2 = jnp.maximum(h2 + b2_ref[...], 0.0)
    out = jnp.dot(h2.astype(w3_ref.dtype), w3_ref[...],
                  preferred_element_type=jnp.float32)
    o_ref[...] = (out + b3_ref[...]).astype(o_ref.dtype)


def dqn_forward(x, params, *, tb=256):
    """x: (B, n, m) float32.  Returns (B, m) float32 Q-values."""
    w1, b1, w2, b2, w3, b3 = params
    B = x.shape[0]
    in_f = w1.shape[0]
    hid = w1.shape[1]
    out_f = w3.shape[1]

    # ---- batch tiling: multiple of 8, capped at `tb`, and >= 2 grid steps
    # when the batch is large enough (lets v7x use both TensorCores).
    if B > 8:
        tb_eff = min(tb, _round_up(max(B // 2, 8), 8))
    else:
        tb_eff = min(tb, 8)
    B_pad = _round_up(B, tb_eff)
    grid = (B_pad // tb_eff,)

    # ---- lane-dense output: pad W3 / b3 out-features to a multiple of 128.
    out_pad = _round_up(out_f, 128)

    # ---- operand prep (plain JAX glue): flatten, bf16 cast, zero-pad.
    x_flat = x.reshape(B, in_f).astype(jnp.bfloat16)
    if B_pad != B:
        x_flat = jnp.pad(x_flat, ((0, B_pad - B), (0, 0)))
    w1b = w1.astype(jnp.bfloat16)
    w2b = w2.astype(jnp.bfloat16)
    w3b = jnp.pad(w3, ((0, 0), (0, out_pad - out_f))).astype(jnp.bfloat16)
    b1f = b1.astype(jnp.float32)
    b2f = b2.astype(jnp.float32)
    b3f = jnp.pad(b3, ((0, 0), (0, out_pad - out_f))).astype(jnp.float32)

    flops = 2 * B_pad * (in_f * hid + hid * hid + hid * out_pad)
    bytes_accessed = int(
        B_pad * in_f * 2                                   # x (bf16)
        + (in_f * hid + hid * hid + hid * out_pad) * 2     # weights (bf16)
        + (hid + hid + out_pad) * 4                        # biases (f32)
        + B_pad * out_pad * 4                              # output (f32)
    )

    out = pl.pallas_call(
        dqn_kernel,
        out_shape=jax.ShapeDtypeStruct((B_pad, out_pad), jnp.float32),
        grid_spec=pltpu.PrefetchScalarGridSpec(
            num_scalar_prefetch=0,
            grid=grid,
            in_specs=[
                pl.BlockSpec((tb_eff, in_f), lambda i: (i, 0)),   # x tile
                # Weights/biases: constant index_map -> resident, no re-DMA
                # across grid steps (total < 1 MB even double-buffered).
                pl.BlockSpec((in_f, hid), lambda i: (0, 0)),      # W1
                pl.BlockSpec((1, hid), lambda i: (0, 0)),         # b1
                pl.BlockSpec((hid, hid), lambda i: (0, 0)),       # W2
                pl.BlockSpec((1, hid), lambda i: (0, 0)),         # b2
                pl.BlockSpec((hid, out_pad), lambda i: (0, 0)),   # W3 (padded)
                pl.BlockSpec((1, out_pad), lambda i: (0, 0)),     # b3 (padded)
            ],
            out_specs=pl.BlockSpec((tb_eff, out_pad), lambda i: (i, 0)),
        ),
        compiler_params=pltpu.CompilerParams(
            dimension_semantics=("parallel",),
        ),
        cost_estimate=pl.CostEstimate(
            flops=flops, transcendentals=0, bytes_accessed=bytes_accessed),
    )(x_flat, w1b, b1f, w2b, b2f, w3b, b3f)

    return out[:B, :out_f]


def init_params(key, n, m, hidden=256):
    """Deterministic init mimicking PyTorch nn.Linear defaults
    (uniform in +/- 1/sqrt(fan_in)); weights stored as (in, out)."""
    def linear(k, fan_in, fan_out):
        kw, kb = jax.random.split(k)
        bound = 1.0 / jnp.sqrt(fan_in)
        w = jax.random.uniform(kw, (fan_in, fan_out), jnp.float32, -bound, bound)
        b = jax.random.uniform(kb, (1, fan_out), jnp.float32, -bound, bound)
        return w, b

    k1, k2, k3 = jax.random.split(key, 3)
    w1, b1 = linear(k1, n * m, hidden)
    w2, b2 = linear(k2, hidden, hidden)
    w3, b3 = linear(k3, hidden, m)
    return (w1, b1, w2, b2, w3, b3)


def dqn_reference_f32(x, params):
    """Full-precision reference (semantics of the PyTorch module)."""
    w1, b1, w2, b2, w3, b3 = params
    B = x.shape[0]
    h = x.reshape(B, -1)
    h = jnp.maximum(h @ w1 + b1, 0.0)
    h = jnp.maximum(h @ w2 + b2, 0.0)
    return h @ w3 + b3


def dqn_reference_bf16(x, params):
    """Reference matching the kernel numerics (bf16 operands, f32 accum)."""
    w1, b1, w2, b2, w3, b3 = params
    B = x.shape[0]
    h = x.reshape(B, -1).astype(jnp.bfloat16)
    h = jnp.dot(h, w1.astype(jnp.bfloat16), preferred_element_type=jnp.float32)
    h = jnp.maximum(h + b1, 0.0)
    h = jnp.dot(h.astype(jnp.bfloat16), w2.astype(jnp.bfloat16),
                preferred_element_type=jnp.float32)
    h = jnp.maximum(h + b2, 0.0)
    out = jnp.dot(h.astype(jnp.bfloat16), w3.astype(jnp.bfloat16),
                  preferred_element_type=jnp.float32)
    return out + b3


if __name__ == "__main__":
    # Small shapes implied by the module: board of n x m, batch of states.
    n, m = 8, 16          # n*m = 128 input features, m = 16 actions
    batch = 64            # gives a 2-step grid with tb_eff = 32

    key = jax.random.PRNGKey(0)
    kx, kp = jax.random.split(key)
    x = jax.random.normal(kx, (batch, n, m), dtype=jnp.float32)
    params = init_params(kp, n, m)

    out = jax.block_until_ready(dqn_forward(x, params))
    assert out.shape == (batch, m)

    ref_matched = dqn_reference_bf16(x, params)
    ref_full = dqn_reference_f32(x, params)
    assert jnp.allclose(out, ref_matched, atol=1e-2, rtol=1e-2), \
        "mismatch vs bf16-matched reference"
    assert jnp.allclose(out, ref_full, atol=1e-1, rtol=5e-2), \
        "mismatch vs f32 reference"

    print("KERNEL_OK")
</pallas_src>

<mosaic_0001>
module attributes {stable_mosaic.version = 11 : i64} {
  func.func @dqn_kernel(%arg0: i32, %arg1: memref<32x128xbf16, #tpu.memory_space<vmem>>, %arg2: memref<128x256xbf16, #tpu.memory_space<vmem>>, %arg3: memref<1x256xf32, #tpu.memory_space<vmem>>, %arg4: memref<256x256xbf16, #tpu.memory_space<vmem>>, %arg5: memref<1x256xf32, #tpu.memory_space<vmem>>, %arg6: memref<256x128xbf16, #tpu.memory_space<vmem>>, %arg7: memref<1x128xf32, #tpu.memory_space<vmem>>, %arg8: memref<32x128xf32, #tpu.memory_space<vmem>>) attributes {dimension_semantics = [#tpu.dimension_semantics<parallel>], iteration_bounds = array<i64: 2>, scalar_prefetch = 0 : i64, scratch_operands = 0 : i64, tpu.core_type = #tpu.core_type<tc>, window_params = [{transform_indices = @transform_0, window_bounds = array<i64: 32, 128>}, {pipeline_mode = #tpu.pipeline_mode<synchronous>, transform_indices = @transform_1, window_bounds = array<i64: 128, 256>}, {pipeline_mode = #tpu.pipeline_mode<synchronous>, transform_indices = @transform_2, window_bounds = array<i64: 1, 256>}, {pipeline_mode = #tpu.pipeline_mode<synchronous>, transform_indices = @transform_3, window_bounds = array<i64: 256, 256>}, {pipeline_mode = #tpu.pipeline_mode<synchronous>, transform_indices = @transform_4, window_bounds = array<i64: 1, 256>}, {pipeline_mode = #tpu.pipeline_mode<synchronous>, transform_indices = @transform_5, window_bounds = array<i64: 256, 128>}, {pipeline_mode = #tpu.pipeline_mode<synchronous>, transform_indices = @transform_6, window_bounds = array<i64: 1, 128>}, {transform_indices = @transform_7, window_bounds = array<i64: 32, 128>}]} {
    %c0 = arith.constant 0 : index
    %c0_0 = arith.constant 0 : index
    %0 = vector.load %arg1[%c0, %c0_0] : memref<32x128xbf16, #tpu.memory_space<vmem>>, vector<32x128xbf16>
    %c0_1 = arith.constant 0 : index
    %c0_2 = arith.constant 0 : index
    %1 = vector.load %arg2[%c0_1, %c0_2] : memref<128x256xbf16, #tpu.memory_space<vmem>>, vector<128x256xbf16>
    %cst = arith.constant dense<0.000000e+00> : vector<32x256xf32>
    %2 = tpu.matmul %0, %1, %cst {dimension_numbers = #tpu.dot_dimension_numbers<[1], [0], [0], [1], [0, 0, 1, 1], [], []>} : vector<32x128xbf16>, vector<128x256xbf16>, vector<32x256xf32> -> vector<32x256xf32>
    %c0_3 = arith.constant 0 : index
    %c0_4 = arith.constant 0 : index
    %3 = vector.load %arg3[%c0_3, %c0_4] : memref<1x256xf32, #tpu.memory_space<vmem>>, vector<1x256xf32>
    %4 = vector.broadcast %3 : vector<1x256xf32> to vector<32x256xf32>
    %5 = arith.addf %2, %4 : vector<32x256xf32>
    %cst_5 = arith.constant 0.000000e+00 : f32
    %6 = vector.broadcast %cst_5 : f32 to vector<32x256xf32>
    %7 = arith.maximumf %5, %6 : vector<32x256xf32>
    %8 = arith.truncf %7 : vector<32x256xf32> to vector<32x256xbf16>
    %c0_6 = arith.constant 0 : index
    %c0_7 = arith.constant 0 : index
    %9 = vector.load %arg4[%c0_6, %c0_7] : memref<256x256xbf16, #tpu.memory_space<vmem>>, vector<256x256xbf16>
    %cst_8 = arith.constant dense<0.000000e+00> : vector<32x256xf32>
    %10 = tpu.matmul %8, %9, %cst_8 {dimension_numbers = #tpu.dot_dimension_numbers<[1], [0], [0], [1], [0, 0, 1, 1], [], []>} : vector<32x256xbf16>, vector<256x256xbf16>, vector<32x256xf32> -> vector<32x256xf32>
    %c0_9 = arith.constant 0 : index
    %c0_10 = arith.constant 0 : index
    %11 = vector.load %arg5[%c0_9, %c0_10] : memref<1x256xf32, #tpu.memory_space<vmem>>, vector<1x256xf32>
    %12 = vector.broadcast %11 : vector<1x256xf32> to vector<32x256xf32>
    %13 = arith.addf %10, %12 : vector<32x256xf32>
    %cst_11 = arith.constant 0.000000e+00 : f32
    %14 = vector.broadcast %cst_11 : f32 to vector<32x256xf32>
    %15 = arith.maximumf %13, %14 : vector<32x256xf32>
    %16 = arith.truncf %15 : vector<32x256xf32> to vector<32x256xbf16>
    %c0_12 = arith.constant 0 : index
    %c0_13 = arith.constant 0 : index
    %17 = vector.load %arg6[%c0_12, %c0_13] : memref<256x128xbf16, #tpu.memory_space<vmem>>, vector<256x128xbf16>
    %cst_14 = arith.constant dense<0.000000e+00> : vector<32x128xf32>
    %18 = tpu.matmul %16, %17, %cst_14 {dimension_numbers = #tpu.dot_dimension_numbers<[1], [0], [0], [1], [0, 0, 1, 1], [], []>} : vector<32x256xbf16>, vector<256x128xbf16>, vector<32x128xf32> -> vector<32x128xf32>
    %c0_15 = arith.constant 0 : index
    %c0_16 = arith.constant 0 : index
    %19 = vector.load %arg7[%c0_15, %c0_16] : memref<1x128xf32, #tpu.memory_space<vmem>>, vector<1x128xf32>
    %20 = vector.broadcast %19 : vector<1x128xf32> to vector<32x128xf32>
    %21 = arith.addf %18, %20 : vector<32x128xf32>
    %c0_17 = arith.constant 0 : index
    %c0_18 = arith.constant 0 : index
    %22 = vector.load %arg8[%c0_17, %c0_18] : memref<32x128xf32, #tpu.memory_space<vmem>>, vector<32x128xf32>
    tpu.vector_store %arg8[%c0_17, %c0_18], %21 {strides = array<i32>} : memref<32x128xf32, #tpu.memory_space<vmem>>, vector<32x128xf32>,
    return
  }
  func.func @transform_0(%arg0: i32) -> (i32, i32) {
    %c0_i32 = arith.constant 0 : i32
    %c0_i32_0 = arith.constant 0 : i32
    return %arg0, %c0_i32 : i32, i32
  }
  func.func @transform_1(%arg0: i32) -> (i32, i32) {
    %c0_i32 = arith.constant 0 : i32
    %c0_i32_0 = arith.constant 0 : i32
    %c0_i32_1 = arith.constant 0 : i32
    return %c0_i32, %c0_i32_0 : i32, i32
  }
  func.func @transform_2(%arg0: i32) -> (i32, i32) {
    %c0_i32 = arith.constant 0 : i32
    %c0_i32_0 = arith.constant 0 : i32
    %c0_i32_1 = arith.constant 0 : i32
    return %c0_i32, %c0_i32_0 : i32, i32
  }
  func.func @transform_3(%arg0: i32) -> (i32, i32) {
    %c0_i32 = arith.constant 0 : i32
    %c0_i32_0 = arith.constant 0 : i32
    %c0_i32_1 = arith.constant 0 : i32
    return %c0_i32, %c0_i32_0 : i32, i32
  }
  func.func @transform_4(%arg0: i32) -> (i32, i32) {
    %c0_i32 = arith.constant 0 : i32
    %c0_i32_0 = arith.constant 0 : i32
    %c0_i32_1 = arith.constant 0 : i32
    return %c0_i32, %c0_i32_0 : i32, i32
  }
  func.func @transform_5(%arg0: i32) -> (i32, i32) {
    %c0_i32 = arith.constant 0 : i32
    %c0_i32_0 = arith.constant 0 : i32
    %c0_i32_1 = arith.constant 0 : i32
    return %c0_i32, %c0_i32_0 : i32, i32
  }
  func.func @transform_6(%arg0: i32) -> (i32, i32) {
    %c0_i32 = arith.constant 0 : i32
    %c0_i32_0 = arith.constant 0 : i32
    %c0_i32_1 = arith.constant 0 : i32
    return %c0_i32, %c0_i32_0 : i32, i32
  }
  func.func @transform_7(%arg0: i32) -> (i32, i32) {
    %c0_i32 = arith.constant 0 : i32
    %c0_i32_0 = arith.constant 0 : i32
    return %arg0, %c0_i32 : i32, i32
  }
}

</mosaic_0001>

<bundles_post_ra>
// kernel: tpu_custom_call.1
= control target key start
LH: loop header
LB: loop body
LE: loop exit
PB: predicated region body
PF: predicated region fallthrough
CT: control target
= control target key end

     0   :  { %s2024_s0 = inlined_call_operand.hbm [shape: bf16[64,128], index: 0, kind: input, shape index: {}]   ;;  %s2025_s1 = inlined_call_operand.hbm [shape: bf16[128,256], index: 1, kind: input, shape index: {}]   ;;  %s2026_s2 = inlined_call_operand.hbm [shape: f32[1,256], index: 2, kind: input, shape index: {}]   ;;  %s2027_s3 = inlined_call_operand.hbm [shape: bf16[256,256], index: 3, kind: input, shape index: {}]   ;;  %s2028_s4 = inlined_call_operand.vmem [shape: f32[1,256], index: 4, kind: input, shape index: {}]   ;;  %s2029_s5 = inlined_call_operand.hbm [shape: bf16[256,128], index: 5, kind: input, shape index: {}]   ;;  %s2030_s6 = inlined_call_operand.vmem [shape: f32[1,128], index: 6, kind: input, shape index: {}]   ;;  %s2031_s7 = inlined_call_operand.hbm [shape: f32[64,128], index: 7, kind: output, shape index: {}]  }
   0x1   :  { %2034 = sst [smem:[#allocation16_spill]] %s2025_s1 }
   0x2   :  { %12 = vsyncpa [#allocation3], 0 }
   0x3   :  { %14 = vsyncpa [#allocation3 + $0x1], 0 }
   0x4   :  { %15 = vsyncpa [#allocation6], 0 }
   0x5   :  { %16 = vsyncpa [#allocation9], 0 }
   0x6   :  { %17 = vsyncpa [#allocation4], 0 }
   0x7   :  { %19 = vsyncpa [#allocation4 + $0x1], 0  ;;  %s1844_s24 = smov 0   ;;  %s1846_s25 = smov 0  }
   0x8   :  { %s1848_s26 = smov 0   ;;  %s1850_s27 = smov 0  }
   0x9 LB: > { %s1865_s28 = sadd.s32 4294967295, %s1792_s27   ;;  %s1120_s29 = sadd.s32 4294967294, %s1792_s27   ;;  %s1792_s27 = sphi %s1850_s27, %s2048_s27   ;;  %s1788_s26 = sphi %s1848_s26, %s2047_s26   ;;  %s1784_s25 = sphi %s1846_s25, %s2046_s25   ;;  %s1780_s24 = sphi %s1844_s24, %s2045_s24  }
   0xa   : > { %p45_p0 = scmp.ne.s32.totalorder %s1784_s25, %s1780_s24  ;;  %p46_p1 = scmp.eq.s32.totalorder %s1865_s28, 0 }
   0xb   : > { %p195_p2 = scmp.eq.s32.totalorder %s1865_s28, 1  ;;  %p201_p3 = scmp.eq.s32.totalorder %s1120_s29, 1 }
   0xc   : > { %p1874_p4 = por %p46_p1, %p45_p0  ;;  %p1121_p5 = scmp.ge.s32.totalorder %s1792_s27, 1 }
   0xd   : > { %p1879_p6 = por %p201_p3, %p45_p0  ;;  %p208_p7 = scmp.lt.s32.totalorder %s1792_s27, 3 }
   0xe   : > { %s2037_s1 = sld [smem:[#allocation16_spill]]  ;;  %s1794_s13 = smov [#allocation5]  }
   0xf   : > { %p1887_p8 = pnand %p1121_p5, %p208_p7  ;;  %s221_s14 = sshll.u32 %s1794_s13, 4  ;;  %s222_s14 = int_to_ptr.vmem [resolvable:$true] %s221_s14 }
  0x10   : > { %s245_s18 = sshll.u32 %s2027_s3, 4  ;;  %s1795_s19 = smov 128   ;;  %s246_s18 = int_to_ptr.hbm [resolvable:$true] %s245_s18 }
  0x11   : > { %p1494_p9 = pneg %p1887_p8  ;;  %s1796_s20 = smov 8  }
  0x12   : > { %s1797_s21 = smov [#allocation8]   ;;  %s234_s9 = sshll.u32 %s2026_s2, 4  ;;  %s235_s9 = int_to_ptr.hbm [resolvable:$true] %s234_s9 }
  0x13   : > { %p1895_p10 = pnand %p1494_p9, %p46_p1  ;;  %s247_s22 = sshll.u32 %s1797_s21, 4  ;;  %s248_s22 = int_to_ptr.vmem [resolvable:$true] %s247_s22 }
  0x14   : > { %s219_s11 = sshll.u32 %s2037_s1, 4  ;;  %s262_s16 = sshll.u32 %s2029_s5, 4  ;;  %s220_s11 = int_to_ptr.hbm [resolvable:$true] %s219_s11  ;;  %s263_s16 = int_to_ptr.hbm [resolvable:$true] %s262_s16 }
  0x15   : > { %1497 = dma.hbm_to_vmem [thread:$0]  (!%p1895_p10), %s220_s11, 2048, %s222_s14, [#allocation6], %s1795_s19, %s1795_s19, %s1796_s20  }
  0x16   : > { %1503 = dma.hbm_to_vmem [thread:$0]  (!%p1895_p10), %s246_s18, 4096, %s248_s22, [#allocation9], %s1795_s19, %s1795_s19, %s1796_s20  }
  0x17   : > { %s1798_s11 = smov [#allocation7]   ;;  %s1799_s17 = smov [#allocation10]  }
  0x18   : > { %s236_s14 = sshll.u32 %s1798_s11, 4  ;;  %s264_s18 = sshll.u32 %s1799_s17, 4  ;;  %s237_s14 = int_to_ptr.vmem [resolvable:$true] %s236_s14  ;;  %s265_s18 = int_to_ptr.vmem [resolvable:$true] %s264_s18 }
  0x19   : > { %1500 = dma.hbm_to_vmem [thread:$0]  (!%p1895_p10), %s235_s9, 32, %s237_s14, [#allocation6]  }
  0x1a   : > { %s2032_s19 = smov 64   ;;  %s2033_s20 = smov 4  }
  0x1b   : > { %1506 = dma.hbm_to_vmem [thread:$0]  (!%p1895_p10), %s263_s16, 2048, %s265_s18, [#allocation9], %s2032_s19, %s2032_s19, %s2033_s20  }
  0x1c   : > { %s1921_s21 = sadd.s32 1, %s1792_s27   ;;  %s32_s23 = sadd.s32 1, %s1788_s26 }
  0x1d   : > { %s29_s22 = ssub.s32 %s1792_s27, %s1921_s21  ;;  %p39_p13 = scmp.ne.s32.totalorder %s1788_s26, %s1784_s25 }
  0x1e   : > { %p30_p12 = scmp.eq.s32.totalorder %s29_s22, 0  ;;  %p40_p0 = scmp.eq.s32.totalorder %s1792_s27, 0 }
  0x1f   : > { %p1934_p5 = por %p195_p2, %p39_p13  ;;  %p1519_p7 = scmp.lt.s32.totalorder %s1792_s27, 2 }
  0x20   : > { %s1930_s29 = scalar_select %p30_p12, %s1788_s26, %s32_s23  }
  0x21   : > { %p41_p3 = por %p40_p0, %p39_p13  ;;  %s281_s15 = sand.u32 1, %s1788_s26  }
  0x22   : > { %s1127_s10 = sshll.u32 %s281_s15, 4  ;;  %s1406_s13 = sshll.u32 %s1792_s27, 4 }
  0x23   : > { %s290_s14 = scalar_lea.hbm %s2024_s0, %s1406_s13  ;;  %s285_s17 = scalar_lea.vmem [#allocation2], %s1127_s10 }
  0x24   : > { %s293_s18 = sshll.u32 %s285_s17, 4  ;;  %s291_s22 = sshll.u32 %s290_s14, 4  ;;  %s294_s18 = int_to_ptr.vmem [resolvable:$true] %s293_s18  ;;  %s292_s22 = int_to_ptr.hbm [resolvable:$true] %s291_s22 }
  0x25   : > { %p1944_p9 = pnand %p1519_p7, %p41_p3  ;;  %s282_s19 = scalar_lea.sflag [#allocation3], %s281_s15 }
  0x26   : > { %s1688_s20 = sshra.s32 %s292_s22, 4  ;;  %s1695_s16 = scalar_lea.hbm %s2024_s0, 32  ;;  %s1689_s20 = int_to_ptr.hbm [resolvable:$true] %s1688_s20 }
  0x27   : > { %s1690_s1 = scalar_lea.hbm %s1689_s20, 16  ;;  %p1692_p10 = pneg %p1944_p9 }
  0x28   : > { %p1691_p2 = scmp.ne.s32.totalorder %s1689_s20, %s1690_s1  ;;  %p1696_p0 = scmp.lt.s32.totalorder %s1689_s20, %s2024_s0 }
  0x29   : > { %p1697_p3 = scmp.lt.s32.totalorder %s1695_s16, %s1690_s1 }
  0x2a   : > { %p1693_p12 = pnand %p1692_p10, %p1691_p2 }
  0x2b   : > { %p1698_p7 = por %p1697_p3, %p1696_p0 }
  0x2c   : > { %p1694_p13 = pneg %p1693_p12 }
  0x2e   : > { %p1699_p11 = pnand %p1698_p7, %p1694_p13 }
  0x30   : > { %1702 = shalt.err (!%p1699_p11)
}
  0x31   : > { %s2042_s15 = smov 4   ;;  %s2043_s17 = smov 64  }
  0x32   : > { %1510 = dma.hbm_to_vmem [thread:$0]  (!%p1944_p9), %s292_s22, 256, %s294_s18, %s282_s19, %s2043_s17, %s2043_s17, %s2042_s15  }
  0x33   : > { %305 = sbr.rel (%p1887_p8) target bundleno = 547 (0x223), region = 48  ;;  %s1964_s13 = sand.u32 (!%p1887_p8), 1, %s1784_s25  }
  0x34   : > { %s1131_s20 = sshll.u32 (!%p1887_p8), %s1964_s13, 4  ;;  %s308_s1 = scalar_lea.sflag (!%p1887_p8), [#allocation3], %s1964_s13 }
  0x35   : > { %s1968_s10 = scalar_lea.vmem (!%p1887_p8), [#allocation2], %s1131_s20 }
  0x38   : > { %1763 = dma.done.wait (%p1874_p4), %s308_s1, 256  }
  0x39   : > { %1765 = vsyncadd (%p1874_p4), %s308_s1, 4294967040 }
  0x3a   : > { %1767 = dma.done.wait (%p46_p1), [#allocation6], 2080  }
  0x3b   : > { %1769 = vsyncadd (%p46_p1), [#allocation6], 4294965216 }
  0x3c   : > { %1771 = dma.done.wait (%p46_p1), [#allocation9], 6144  }
  0x3d   : > { %1773 = vsyncadd (%p46_p1), [#allocation9], 4294961152  ;;  %v1203_v0 = vld [vmem:[#allocation5 + $0x70] sm:$0xf]  ;;  %v1424_v1 = vld [vmem:[#allocation5 + $0x74] sm:$0xf0] }
  0x3e   : > { %v1423_v2 = vld [vmem:[#allocation5 + $0x74] sm:$0xf]  ;;  %v1204_v3 = vor.u32 %v1424_v1, %v1203_v0  ;;  %v1205_v4 = vld [vmem:[#allocation5 + $0x78] sm:$0xf0]  ;;  %v1195_v5 = vld [vmem:[#allocation5 + $0x60] sm:$0xf] }
  0x3f   : > { %v1422_v6 = vld [vmem:[#allocation5 + $0x64] sm:$0xf0]  ;;  %v1208_v7 = vor.u32 %v1423_v2, %v1205_v4  ;;  %v1421_v8 = vld [vmem:[#allocation5 + $0x64] sm:$0xf]  ;;  %v1197_v9 = vld [vmem:[#allocation5 + $0x68] sm:$0xf0] }
  0x40   : > { %483 = vmatpush.bf16.msra.mxu0 %v1204_v3  ;;  %v1196_v10 = vor.u32 %v1422_v6, %v1195_v5  ;;  %v1200_v11 = vor.u32 %v1421_v8, %v1197_v9  ;;  %v1187_v12 = vld [vmem:[#allocation5 + $0x50] sm:$0xf]  ;;  %v1420_v13 = vld [vmem:[#allocation5 + $0x54] sm:$0xf0]  ;;  %v1419_v14 = vld [vmem:[#allocation5 + $0x54] sm:$0xf] }
  0x41   : > { %502 = vmatpush.bf16.msra.mxu1 %v1208_v7  ;;  %v1189_v15 = vld [vmem:[#allocation5 + $0x58] sm:$0xf0]  ;;  %v1188_v16 = vor.u32 %v1420_v13, %v1187_v12  ;;  %v1179_v18 = vld [vmem:[#allocation5 + $0x40] sm:$0xf]  ;;  %v1418_v19 = vld [vmem:[#allocation5 + $0x44] sm:$0xf0] }
  0x42   : > { %v1192_v17 = vor.u32 %v1419_v14, %v1189_v15  ;;  %v1417_v20 = vld [vmem:[#allocation5 + $0x44] sm:$0xf]  ;;  %v1181_v21 = vld [vmem:[#allocation5 + $0x48] sm:$0xf0]  ;;  %v1180_v22 = vor.u32 %v1418_v19, %v1179_v18  ;;  %v1171_v24 = vld [vmem:[#allocation5 + $0x30] sm:$0xf] }
  0x43   : > { %v1184_v23 = vor.u32 %v1417_v20, %v1181_v21  ;;  %v1416_v25 = vld [vmem:[#allocation5 + $0x34] sm:$0xf0]  ;;  %v1415_v26 = vld [vmem:[#allocation5 + $0x34] sm:$0xf]  ;;  %v1173_v27 = vld [vmem:[#allocation5 + $0x38] sm:$0xf0] }
  0x44   : > { %484 = vmatpush.bf16.msra.mxu0 %v1196_v10  ;;  %v1172_v28 = vor.u32 %v1416_v25, %v1171_v24  ;;  %v1176_v29 = vor.u32 %v1415_v26, %v1173_v27  ;;  %v1163_v30 = vld [vmem:[#allocation5 + $0x20] sm:$0xf]  ;;  %v1414_v31 = vld [vmem:[#allocation5 + $0x24] sm:$0xf0]  ;;  %v1413_v32 = vld [vmem:[#allocation5 + $0x24] sm:$0xf] }
  0x45   : > { %503 = vmatpush.bf16.msra.mxu1 %v1200_v11  ;;  %v1165_v33 = vld [vmem:[#allocation5 + $0x28] sm:$0xf0]  ;;  %v1164_v34 = vor.u32 %v1414_v31, %v1163_v30  ;;  %v1267_v35 = vld [vmem:[#allocation8 + $0x70] sm:$0xf]  ;;  %v1440_v36 = vld [vmem:[#allocation8 + $0x74] sm:$0xf0] }
  0x46   : > { %v1331_v37 = vld [vmem:[#allocation8 + $0xf0] sm:$0xf]  ;;  %v1168_v38 = vor.u32 %v1413_v32, %v1165_v33  ;;  %v1412_v40 = vld [vmem:[#allocation5 + $0x14] sm:$0xf0]  ;;  %v1268_v41 = vor.u32 %v1440_v36, %v1267_v35  ;;  %v1157_v44 = vld [vmem:[#allocation5 + $0x18] sm:$0xf0] }
  0x47   : > { %v1155_v39 = vld [vmem:[#allocation5 + $0x10] sm:$0xf]  ;;  %v1456_v42 = vld [vmem:[#allocation8 + $0xf4] sm:$0xf0]  ;;  %v1411_v43 = vld [vmem:[#allocation5 + $0x14] sm:$0xf] }
  0x48   : > { %485 = vmatpush.bf16.msra.mxu0 %v1188_v16  ;;  %v1332_v45 = vor.u32 %v1456_v42, %v1331_v37  ;;  %v1259_v46 = vld [vmem:[#allocation8 + $0x60] sm:$0xf]  ;;  %731 = vmatpush.bf16.msra.mxu2 %v1268_v41  ;;  %v1438_v48 = vld [vmem:[#allocation8 + $0x64] sm:$0xf0]  ;;  %v1156_v51 = vor.u32 %v1412_v40, %v1155_v39  ;;  %v1160_v57 = vor.u32 %v1411_v43, %v1157_v44  ;;  %v1439_v58 = vld [vmem:[#allocation8 + $0x74] sm:$0xf] }
  0x49   : > { %504 = vmatpush.bf16.msra.mxu1 %v1192_v17  ;;  %v1147_v47 = vld [vmem:[#allocation5] sm:$0xf]  ;;  %v1454_v50 = vld [vmem:[#allocation8 + $0xe4] sm:$0xf0]  ;;  %v1409_v53 = vld [vmem:[#allocation5 + $0x4] sm:$0xf]  ;;  %v1260_v55 = vor.u32 %v1438_v48, %v1259_v46 }
  0x4a   : > { %v1323_v49 = vld [vmem:[#allocation8 + $0xe0] sm:$0xf]  ;;  %v1410_v52 = vld [vmem:[#allocation5 + $0x4] sm:$0xf0]  ;;  %v1149_v54 = vld [vmem:[#allocation5 + $0x8] sm:$0xf0]  ;;  %750 = vmatpush.bf16.msra.mxu3 %v1332_v45 }
  0x4b   : > { %v1324_v56 = vor.u32 %v1454_v50, %v1323_v49  ;;  %v1251_v59 = vld [vmem:[#allocation8 + $0x50] sm:$0xf]  ;;  %v1436_v60 = vld [vmem:[#allocation8 + $0x54] sm:$0xf0]  ;;  %v1269_v61 = vld [vmem:[#allocation8 + $0x78] sm:$0xf0]  ;;  %v1148_v3 = vor.u32 %v1410_v52, %v1147_v47  ;;  %v1152_v7 = vor.u32 %v1409_v53, %v1149_v54 }
  0x4c   : > { %486 = vmatpush.bf16.msra.mxu0 %v1180_v22  ;;  %v1315_v62 = vld [vmem:[#allocation8 + $0xd0] sm:$0xf]  ;;  %v1452_v63 = vld [vmem:[#allocation8 + $0xd4] sm:$0xf0]  ;;  %v1455_v0 = vld [vmem:[#allocation8 + $0xf4] sm:$0xf]  ;;  %732 = vmatpush.bf16.msra.mxu2 %v1260_v55  ;;  %v1252_v2 = vor.u32 %v1436_v60, %v1251_v59  ;;  %v1272_v8 = vor.u32 %v1439_v58, %v1269_v61 }
  0x4d   : > { %505 = vmatpush.bf16.msra.mxu1 %v1184_v23  ;;  %v1333_v1 = vld [vmem:[#allocation8 + $0xf8] sm:$0xf0]  ;;  %v1316_v4 = vor.u32 %v1452_v63, %v1315_v62  ;;  %v1243_v5 = vld [vmem:[#allocation8 + $0x40] sm:$0xf]  ;;  %v1434_v6 = vld [vmem:[#allocation8 + $0x44] sm:$0xf0] }
  0x4e   : > { %751 = vmatpush.bf16.msra.mxu3 %v1324_v56  ;;  %v1307_v9 = vld [vmem:[#allocation8 + $0xc0] sm:$0xf]  ;;  %v1450_v10 = vld [vmem:[#allocation8 + $0xc4] sm:$0xf0]  ;;  %v1336_v11 = vor.u32 %v1455_v0, %v1333_v1  ;;  %v1437_v12 = vld [vmem:[#allocation8 + $0x64] sm:$0xf]  ;;  %v1244_v17 = vor.u32 %v1434_v6, %v1243_v5 }
  0x4f   : > { %v1261_v13 = vld [vmem:[#allocation8 + $0x68] sm:$0xf0]  ;;  %v1453_v15 = vld [vmem:[#allocation8 + $0xe4] sm:$0xf]  ;;  %v1308_v18 = vor.u32 %v1450_v10, %v1307_v9  ;;  %v1435_v21 = vld [vmem:[#allocation8 + $0x54] sm:$0xf] }
  0x50   : > { %487 = vmatpush.bf16.msra.mxu0 %v1172_v28  ;;  %v1407_v14 = vld [vmem:[%s1968_s10] sm:$0xff]  ;;  %733 = vmatpush.bf16.msra.mxu2 %v1252_v2  ;;  %v1264_v19 = vor.u32 %v1437_v12, %v1261_v13  ;;  %v1408_v33 = vld [vmem:[%s1968_s10 + $0x8] sm:$0xff]  ;;  %s1136_s22 = sshll.u32 %s1964_s13, 5  ;;  %s1473_s16 = sshll.u32 %s1865_s28, 5 }
  0x51   : > { %506 = vmatpush.bf16.msra.mxu1 %v1176_v29  ;;  %v1325_v16 = vld [vmem:[#allocation8 + $0xe8] sm:$0xf0]  ;;  %v1253_v22 = vld [vmem:[#allocation8 + $0x58] sm:$0xf0]  ;;  %v1451_v23 = vld [vmem:[#allocation8 + $0xd4] sm:$0xf]  ;;  %s1005_s15 = scalar_lea.hbm %s2031_s7, %s1473_s16 }
  0x52   : > { %752 = vmatpush.bf16.msra.mxu3 %v1316_v4  ;;  %v1328_v20 = vor.u32 %v1453_v15, %v1325_v16  ;;  %v1317_v24 = vld [vmem:[#allocation8 + $0xd8] sm:$0xf0]  ;;  %v1256_v25 = vor.u32 %v1435_v21, %v1253_v22  ;;  %v1433_v27 = vld [vmem:[#allocation8 + $0x44] sm:$0xf]  ;;  %v1245_v28 = vld [vmem:[#allocation8 + $0x48] sm:$0xf0] }
  0x53   : > { %v1320_v26 = vor.u32 %v1451_v23, %v1317_v24  ;;  %v1449_v29 = vld [vmem:[#allocation8 + $0xc4] sm:$0xf]  ;;  %v1309_v30 = vld [vmem:[#allocation8 + $0xc8] sm:$0xf0]  ;;  %v1248_v31 = vor.u32 %v1433_v27, %v1245_v28  ;;  %v1432_v35 = vld [vmem:[#allocation8 + $0x34] sm:$0xf0] }
  0x54   : > { %488 = vmatpush.bf16.msra.mxu0 %v1164_v34  ;;  %734 = vmatpush.bf16.msra.mxu2 %v1244_v17  ;;  %v1312_v32 = vor.u32 %v1449_v29, %v1309_v30  ;;  %v1235_v34 = vld [vmem:[#allocation8 + $0x30] sm:$0xf]  ;;  %v1431_v39 = vld [vmem:[#allocation8 + $0x34] sm:$0xf]  ;;  %v1237_v40 = vld [vmem:[#allocation8 + $0x38] sm:$0xf0] }
  0x55   : > { %507 = vmatpush.bf16.msra.mxu1 %v1168_v38  ;;  %v1299_v36 = vld [vmem:[#allocation8 + $0xb0] sm:$0xf]  ;;  %v1236_v37 = vor.u32 %v1432_v35, %v1235_v34  ;;  %v1448_v38 = vld [vmem:[#allocation8 + $0xb4] sm:$0xf0]  ;;  %v1240_v42 = vor.u32 %v1431_v39, %v1237_v40  ;;  %v1447_v43 = vld [vmem:[#allocation8 + $0xb4] sm:$0xf] }
  0x56   : > { %753 = vmatpush.bf16.msra.mxu3 %v1308_v18  ;;  %v1300_v41 = vor.u32 %v1448_v38, %v1299_v36  ;;  %v1301_v44 = vld [vmem:[#allocation8 + $0xb8] sm:$0xf0]  ;;  %v1227_v46 = vld [vmem:[#allocation8 + $0x20] sm:$0xf]  ;;  %v1430_v47 = vld [vmem:[#allocation8 + $0x24] sm:$0xf0] }
  0x57   : > { %v1304_v45 = vor.u32 %v1447_v43, %v1301_v44  ;;  %v1228_v48 = vor.u32 %v1430_v47, %v1227_v46  ;;  %v1291_v49 = vld [vmem:[#allocation8 + $0xa0] sm:$0xf]  ;;  %v1446_v50 = vld [vmem:[#allocation8 + $0xa4] sm:$0xf0]  ;;  %v1229_v53 = vld [vmem:[#allocation8 + $0x28] sm:$0xf0] }
  0x58   : > { %489 = vmatpush.bf16.msra.mxu0 %v1156_v51  ;;  %735 = vmatpush.bf16.msra.mxu2 %v1236_v37  ;;  %v1429_v51 = vld [vmem:[#allocation8 + $0x24] sm:$0xf]  ;;  %v1292_v52 = vor.u32 %v1446_v50, %v1291_v49  ;;  %v1293_v55 = vld [vmem:[#allocation8 + $0xa8] sm:$0xf0]  ;;  %v1219_v58 = vld [vmem:[#allocation8 + $0x10] sm:$0xf] }
  0x59   : > { %508 = vmatpush.bf16.msra.mxu1 %v1160_v57  ;;  %v1445_v54 = vld [vmem:[#allocation8 + $0xa4] sm:$0xf]  ;;  %v1232_v56 = vor.u32 %v1429_v51, %v1229_v53  ;;  %v1428_v59 = vld [vmem:[#allocation8 + $0x14] sm:$0xf0]  ;;  %v1283_v60 = vld [vmem:[#allocation8 + $0x90] sm:$0xf] }
  0x5a   : > { %754 = vmatpush.bf16.msra.mxu3 %v1300_v41  ;;  %v1296_v57 = vor.u32 %v1445_v54, %v1293_v55  ;;  %v1220_v61 = vor.u32 %v1428_v59, %v1219_v58  ;;  %v1444_v62 = vld [vmem:[#allocation8 + $0x94] sm:$0xf0]  ;;  %v1427_v63 = vld [vmem:[#allocation8 + $0x14] sm:$0xf]  ;;  %v1221_v0 = vld [vmem:[#allocation8 + $0x18] sm:$0xf0] }
  0x5b   : > { %v1284_v1 = vor.u32 %v1444_v62, %v1283_v60  ;;  %v1224_v2 = vor.u32 %v1427_v63, %v1221_v0  ;;  %v1285_v4 = vld [vmem:[#allocation8 + $0x98] sm:$0xf0]  ;;  %v1211_v6 = vld [vmem:[#allocation8] sm:$0xf]  ;;  %v1442_v10 = vld [vmem:[#allocation8 + $0x84] sm:$0xf0] }
  0x5c   : > { %490 = vmatpush.bf16.msra.mxu0 %v1148_v3  ;;  %736 = vmatpush.bf16.msra.mxu2 %v1228_v48  ;;  %v1443_v3 = vld [vmem:[#allocation8 + $0x94] sm:$0xf]  ;;  %v1213_v12 = vld [vmem:[#allocation8 + $0x8] sm:$0xf0]  ;;  %v1441_v15 = vld [vmem:[#allocation8 + $0x84] sm:$0xf] }
  0x5d   : > { %509 = vmatpush.bf16.msra.mxu1 %v1152_v7  ;;  %v1288_v5 = vor.u32 %v1443_v3, %v1285_v4  ;;  %v1426_v7 = vld [vmem:[#allocation8 + $0x4] sm:$0xf0]  ;;  %v1277_v16 = vld [vmem:[#allocation8 + $0x88] sm:$0xf0]  ;;  %v385_v18 = vld [vmem:[#allocation7] sm:$0x3] }
  0x5e   : > { %755 = vmatpush.bf16.msra.mxu3 %v1292_v52  ;;  %v1212_v9 = vor.u32 %v1426_v7, %v1211_v6  ;;  %v1280_v17 = vor.u32 %v1441_v15, %v1277_v16  ;;  %v1464_v21 = vld [vmem:[#allocation10 + $0x38] sm:$0xff]  ;;  %v1471_v23 = vld [vmem:[#allocation10 + $0x70] sm:$0xff]  ;;  %v1470_v27 = vld [vmem:[#allocation10 + $0x68] sm:$0xff]  ;;  %s362_s23 = scalar_lea.vmem [#allocation11], %s1136_s22  ;;  %s1008_s20 = sshll.u32 %s1005_s15, 4  ;;  %s1009_s20 = int_to_ptr.hbm [resolvable:$true] %s1008_s20 }
  0x5f   : > { %491 = vmatmul.bf16.vlgmr.msra.gmra.mxu0 %v1407_v14  ;;  %v1463_v24 = vld [vmem:[#allocation10 + $0x30] sm:$0xff]  ;;  %v1462_v28 = vld [vmem:[#allocation10 + $0x28] sm:$0xff]  ;;  %v1469_v35 = vld [vmem:[#allocation10 + $0x60] sm:$0xff]  ;;  %s1006_s17 = sshll.u32 %s362_s23, 4  ;;  %s994_s1 = scalar_lea.sflag [#allocation4], %s1964_s13  ;;  %s1007_s17 = int_to_ptr.vmem [resolvable:$true] %s1006_s17 }
  0x60   : > { %769 = vmatpush.bf16.msrb.mxu0 %v1272_v8  ;;  %510 = vmatmul.bf16.vlgmr.msra.gmra.mxu1 %v1407_v14  ;;  %v1275_v8 = vld [vmem:[#allocation8 + $0x80] sm:$0xf]  ;;  %v1467_v58 = vld [vmem:[#allocation10 + $0x50] sm:$0xff]  ;;  %v1460_v59 = vld [vmem:[#allocation10 + $0x18] sm:$0xff]  ;;  %s1732_s10 = sshra.s32 %s1009_s20, 4  ;;  %s1738_s19 = scalar_lea.hbm %s2031_s7, 64  ;;  %s1733_s10 = int_to_ptr.hbm [resolvable:$true] %s1732_s10 }
  0x61   : > { %788 = vmatpush.bf16.msrb.mxu1 %v1336_v11  ;;  %737 = vmatpush.bf16.msra.mxu2 %v1220_v61  ;;  %v1425_v11 = vld [vmem:[#allocation8 + $0x4] sm:$0xf]  ;;  %v1276_v13 = vor.u32 %v1442_v10, %v1275_v8  ;;  %v1466_v60 = vld [vmem:[#allocation10 + $0x48] sm:$0xff]  ;;  %v1459_v61 = vld [vmem:[#allocation10 + $0x10] sm:$0xff]  ;;  %s1734_s28 = scalar_lea.hbm %s1733_s10, 32  ;;  %p1739_p11 = scmp.lt.s32.totalorder %s1733_s10, %s2031_s7 }
  0x62   : > { %756 = vmatpush.bf16.msra.mxu3 %v1284_v1  ;;  %v1216_v14 = vor.u32 %v1425_v11, %v1213_v12  ;;  %v1465_v62 = vld [vmem:[#allocation10 + $0x40] sm:$0xff]  ;;  %v1458_v63 = vld [vmem:[#allocation10 + $0x8] sm:$0xff]  ;;  %v565_v1 = vld [vmem:[%s2028_s4] sm:$0x3]  ;;  %p1735_p1 = scmp.ne.s32.totalorder %s1733_s10, %s1734_s28  ;;  %p1740_p9 = scmp.lt.s32.totalorder %s1738_s19, %s1734_s28 }
  0x63   : > { %v1457_v0 = vld [vmem:[#allocation10] sm:$0xff]  ;;  %v568_v3 = vperm.slane %v565_v1, 1  ;;  %v567_v7 = vperm.slane %v565_v1, 0 }
  0x64   : > { %770 = vmatpush.bf16.msrb.mxu0 %v1264_v19  ;;  %p1736_p4 = pnand %p1735_p1, %p1934_p5  ;;  %p1741_p2 = por %p1740_p9, %p1739_p11 }
  0x65   : > { %789 = vmatpush.bf16.msrb.mxu1 %v1328_v20  ;;  %738 = vmatpush.bf16.msra.mxu2 %v1212_v9  ;;  %v1472_v20 = vld [vmem:[#allocation10 + $0x78] sm:$0xff] }
  0x66   : > { %757 = vmatpush.bf16.msra.mxu3 %v1276_v13  ;;  %p1737_p8 = pneg %p1736_p4 }
  0x68   : > { %771 = vmatpush.bf16.msrb.mxu0 %v1256_v25  ;;  %v387_v25 = vperm.slane %v385_v18, 0  ;;  %p1742_p10 = pnand %p1741_p2, %p1737_p8 }
  0x69   : > { %790 = vmatpush.bf16.msrb.mxu1 %v1320_v26  ;;  %951 = vmatpush.bf16.msrb.mxu2 %v1464_v21  ;;  %v388_v26 = vperm.slane %v385_v18, 1 }
  0x6a   : > { %970 = vmatpush.bf16.msrb.mxu3 %v1472_v20 }
  0x6c   : > { %772 = vmatpush.bf16.msrb.mxu0 %v1248_v31 }
  0x6d   : > { %791 = vmatpush.bf16.msrb.mxu1 %v1312_v32  ;;  %952 = vmatpush.bf16.msrb.mxu2 %v1463_v24 }
  0x6e   : > { %971 = vmatpush.bf16.msrb.mxu3 %v1471_v23 }
  0x6f   : > { %496 = vmatmul.bf16.gmra.mxu0 %v1408_v33 }
  0x70   : > { %515 = vmatmul.bf16.gmra.mxu1 %v1408_v33  ;;  %773 = vmatpush.bf16.msrb.mxu0 %v1240_v42 }
  0x71   : > { %792 = vmatpush.bf16.msrb.mxu1 %v1304_v45  ;;  %953 = vmatpush.bf16.msrb.mxu2 %v1462_v28 }
  0x72   : > { %972 = vmatpush.bf16.msrb.mxu3 %v1470_v27 }
  0x74   : > { %774 = vmatpush.bf16.msrb.mxu0 %v1232_v56  ;;  %v1468_v56 = vld [vmem:[#allocation10 + $0x58] sm:$0xff] }
  0x75   : > { %793 = vmatpush.bf16.msrb.mxu1 %v1296_v57  ;;  %v1461_v57 = vld [vmem:[#allocation10 + $0x20] sm:$0xff] }
  0x76   : > { %973 = vmatpush.bf16.msrb.mxu3 %v1469_v35  ;;  %954 = vmatpush.bf16.msrb.mxu2 %v1461_v57 }
  0x78   : > { %775 = vmatpush.bf16.msrb.mxu0 %v1224_v2 }
  0x79   : > { %794 = vmatpush.bf16.msrb.mxu1 %v1288_v5 }
  0x7a   : > { %974 = vmatpush.bf16.msrb.mxu3 %v1468_v56  ;;  %955 = vmatpush.bf16.msrb.mxu2 %v1460_v59 }
  0x7c   : > { %776 = vmatpush.bf16.msrb.mxu0 %v1216_v14 }
  0x7d   : > { %795 = vmatpush.bf16.msrb.mxu1 %v1280_v17 }
  0x7e   : > { %975 = vmatpush.bf16.msrb.mxu3 %v1467_v58  ;;  %956 = vmatpush.bf16.msrb.mxu2 %v1459_v61 }
  0x82   : > { %976 = vmatpush.bf16.msrb.mxu3 %v1466_v60  ;;  %957 = vmatpush.bf16.msrb.mxu2 %v1458_v63 }
  0x86   : > { %977 = vmatpush.bf16.msrb.mxu3 %v1465_v62  ;;  %958 = vmatpush.bf16.msrb.mxu2 %v1457_v0 }
  0xdc   : > { %v492_v19 = vpop.f32.mrf.mxu0 }
  0xdd   : > { %v511_v22 = vpop.f32.mrf.mxu1  ;;  %v493_v29 = vadd.f32 %v492_v19, %v387_v25 }
  0xde   : > { %v512_v30 = vadd.f32 %v511_v22, %v388_v26 }
  0xdf   : > { %v521_v36 = vmax.f32 %v493_v29, 0.0 }
  0xe0   : > { %v522_v38 = vmax.f32 %v512_v30, 0.0 }
  0xe4   : > { %v494_v31 = vpop.f32.mrf.mxu0 }
  0xe5   : > { %v495_v32 = vadd.f32 %v494_v31, %v387_v25  ;;  %v513_v33 = vpop.f32.mrf.mxu1 }
  0xe6   : > { %v514_v34 = vadd.f32 %v513_v33, %v388_v26 }
  0xe7   : > { %v523_v37 = vmax.f32 %v495_v32, 0.0 }
  0xe8   : > { %v524_v39 = vmax.f32 %v514_v34, 0.0 }
  0xe9   : > { %v529_v40 = vpack.c.bf16 %v523_v37, %v521_v36 }
  0xea   : > { %v530_v41 = vpack.c.bf16 %v524_v39, %v522_v38 }
  0xeb   : > { %739 = vmatmul.bf16.vlgmr.msra.gmra.mxu2 %v529_v40  ;;  %777 = vmatmul.bf16.vlgmr.msrb.gmra.mxu0 %v529_v40 }
  0xec   : > { %758 = vmatmul.bf16.vlgmr.msra.gmra.mxu3 %v530_v41  ;;  %796 = vmatmul.bf16.vlgmr.msrb.gmra.mxu1 %v530_v41  ;;  %v497_v42 = vpop.f32.mrf.mxu0 }
  0xed   : > { %v516_v43 = vpop.f32.mrf.mxu1  ;;  %v498_v44 = vadd.f32 %v497_v42, %v387_v25 }
  0xee   : > { %v517_v45 = vadd.f32 %v516_v43, %v388_v26 }
  0xef   : > { %v525_v50 = vmax.f32 %v498_v44, 0.0 }
  0xf0   : > { %v526_v52 = vmax.f32 %v517_v45, 0.0 }
  0xf4   : > { %v499_v46 = vpop.f32.mrf.mxu0 }
  0xf5   : > { %v500_v47 = vadd.f32 %v499_v46, %v387_v25  ;;  %v518_v48 = vpop.f32.mrf.mxu1 }
  0xf6   : > { %v519_v49 = vadd.f32 %v518_v48, %v388_v26 }
  0xf7   : > { %v527_v51 = vmax.f32 %v500_v47, 0.0 }
  0xf8   : > { %v528_v53 = vmax.f32 %v519_v49, 0.0  ;;  %v1567_v49 = vld [vmem:[%s2030_s6] ss:$0 sm:$0xff] }
  0xf9   : > { %v531_v54 = vpack.c.bf16 %v527_v51, %v525_v50 }
  0xfa   : > { %v532_v55 = vpack.c.bf16 %v528_v53, %v526_v52 }
  0xfb   : > { %744 = vmatmul.bf16.gmra.mxu2 %v531_v54  ;;  %782 = vmatmul.bf16.gmra.mxu0 %v531_v54 }
  0xfc   : > { %763 = vmatmul.bf16.gmra.mxu3 %v532_v55  ;;  %801 = vmatmul.bf16.gmra.mxu1 %v532_v55 }
 0x168   : > { %v778_v2 = vpop.f32.mrf.mxu0 }
 0x169   : > { %v797_v4 = vpop.f32.mrf.mxu1  ;;  %v779_v5 = vadd.f32 %v778_v2, %v568_v3 }
 0x16b   : > { %v798_v10 = vadd.f32 %v797_v4, %v779_v5 }
 0x16d   : > { %v808_v15 = vmax.f32 %v798_v10, 0.0 }
 0x16e   : > { %v740_v6 = vpop.f32.mrf.mxu2 }
 0x16f   : > { %v759_v8 = vpop.f32.mrf.mxu3  ;;  %v741_v13 = vadd.f32 %v740_v6, %v567_v7 }
 0x170   : > { %v780_v9 = vpop.f32.mrf.mxu0 }
 0x171   : > { %v781_v11 = vadd.f32 %v780_v9, %v568_v3  ;;  %v799_v12 = vpop.f32.mrf.mxu1  ;;  %v760_v18 = vadd.f32 %v759_v8, %v741_v13 }
 0x173   : > { %v800_v14 = vadd.f32 %v799_v12, %v781_v11  ;;  %v807_v25 = vmax.f32 %v760_v18, 0.0 }
 0x175   : > { %v810_v16 = vmax.f32 %v800_v14, 0.0 }
 0x176   : > { %v742_v17 = vpop.f32.mrf.mxu2 }
 0x177   : > { %v816_v19 = vpack.c.bf16 %v810_v16, %v808_v15  ;;  %v743_v20 = vadd.f32 %v742_v17, %v567_v7  ;;  %v761_v21 = vpop.f32.mrf.mxu3 }
 0x178   : > { %v783_v22 = vpop.f32.mrf.mxu0 }
 0x179   : > { %v762_v23 = vadd.f32 %v761_v21, %v743_v20  ;;  %v802_v24 = vpop.f32.mrf.mxu1  ;;  %978 = vmatmul.bf16.vlgmr.msrb.gmra.mxu3 %v816_v19  ;;  %v784_v28 = vadd.f32 %v783_v22, %v568_v3 }
 0x17b   : > { %v809_v26 = vmax.f32 %v762_v23, 0.0  ;;  %v803_v32 = vadd.f32 %v802_v24, %v784_v28 }
 0x17d   : > { %v815_v27 = vpack.c.bf16 %v809_v26, %v807_v25  ;;  %v812_v37 = vmax.f32 %v803_v32, 0.0 }
 0x17e   : > { %v745_v29 = vpop.f32.mrf.mxu2 }
 0x17f   : > { %v764_v30 = vpop.f32.mrf.mxu3  ;;  %959 = vmatmul.bf16.vlgmr.msrb.gmra.mxu2 %v815_v27  ;;  %v746_v35 = vadd.f32 %v745_v29, %v567_v7 }
 0x180   : > { %v785_v31 = vpop.f32.mrf.mxu0 }
 0x181   : > { %v786_v33 = vadd.f32 %v785_v31, %v568_v3  ;;  %v804_v34 = vpop.f32.mrf.mxu1  ;;  %v765_v40 = vadd.f32 %v764_v30, %v746_v35 }
 0x183   : > { %v805_v36 = vadd.f32 %v804_v34, %v786_v33  ;;  %v811_v45 = vmax.f32 %v765_v40, 0.0 }
 0x185   : > { %v814_v38 = vmax.f32 %v805_v36, 0.0 }
 0x186   : > { %v747_v39 = vpop.f32.mrf.mxu2 }
 0x187   : > { %v748_v41 = vadd.f32 %v747_v39, %v567_v7  ;;  %v818_v42 = vpack.c.bf16 %v814_v38, %v812_v37  ;;  %v766_v43 = vpop.f32.mrf.mxu3 }
 0x189   : > { %v767_v44 = vadd.f32 %v766_v43, %v748_v41  ;;  %983 = vmatmul.bf16.gmra.mxu3 %v818_v42 }
 0x18b   : > { %v813_v46 = vmax.f32 %v767_v44, 0.0 }
 0x18d   : > { %v817_v47 = vpack.c.bf16 %v813_v46, %v811_v45 }
 0x18f   : > { %964 = vmatmul.bf16.gmra.mxu2 %v817_v47 }
 0x1fc   : > { %v979_v48 = vpop.f32.mrf.mxu3 }
 0x202   : > { %v960_v50 = vpop.f32.mrf.mxu2 }
 0x203   : > { %v961_v51 = vadd.f32 %v1567_v49, %v960_v50 }
 0x204   : > { %v981_v53 = vpop.f32.mrf.mxu3 }
 0x205   : > { %v980_v52 = vadd.f32 %v979_v48, %v961_v51 }
 0x207   : > { %989 = vst [vmem:[%s362_s23] sm:$0xff] %v980_v52 }
 0x20a   : > { %v962_v54 = vpop.f32.mrf.mxu2 }
 0x20b   : > { %v963_v55 = vadd.f32 %v1567_v49, %v962_v54 }
 0x20c   : > { %v984_v57 = vpop.f32.mrf.mxu3 }
 0x20d   : > { %v982_v56 = vadd.f32 %v981_v53, %v963_v55 }
 0x20f   : > { %990 = vst [vmem:[%s362_s23 + $0x8] sm:$0xff] %v982_v56 }
 0x212   : > { %v965_v58 = vpop.f32.mrf.mxu2 }
 0x213   : > { %v966_v59 = vadd.f32 %v1567_v49, %v965_v58 }
 0x214   : > { %v986_v63 = vpop.f32.mrf.mxu3 }
 0x215   : > { %v985_v60 = vadd.f32 %v984_v57, %v966_v59 }
 0x217   : > { %991 = vst [vmem:[%s362_s23 + $0x10] sm:$0xff] %v985_v60 }
 0x21a   : > { %v967_v61 = vpop.f32.mrf.mxu2 }
 0x21b   : > { %v968_v62 = vadd.f32 %v1567_v49, %v967_v61 }
 0x21d   : > { %v987_v0 = vadd.f32 %v986_v63, %v968_v62 }
 0x21f   : > { %992 = vst [vmem:[%s362_s23 + $0x18] sm:$0xff] %v987_v0 }
 0x220   : > { %1745 = shalt.err (!%p1742_p10)
}
 0x221   : > { %s1802_s13 = smov 128   ;;  %s1803_s23 = smov 8  }
 0x222   : > { %1492 = dma.vmem_to_hbm [thread:$0]  (%p1934_p5), %s1007_s17, 512, %s1009_s20, %s994_s1, %s1802_s13, %s1802_s13, %s1803_s23  }
 0x223 PF: > { %s1023_s16 = sand.u32 1, %s1780_s24   ;;  %p2044_p12 = scmp.ge.s32.totalorder %s1792_s27, 2 }
 0x224   : > { %s1024_s11 = scalar_lea.sflag [#allocation4], %s1023_s16 }
 0x225   : > { %p1512_p13 = pnand %p2044_p12, %p1879_p6 }
 0x227   : > { %p1513_p0 = pneg %p1512_p13 }
 0x229   : > { %1775 = dma.done.wait (%p1513_p0), %s1024_s11, 512  }
 0x22a   : > { %1777 = vsyncadd (%p1513_p0), %s1024_s11, 4294966784  ;;  %p22_p3 = scmp.ge.s32.totalorder %s1921_s21, 4   ;;  %s2045_s24 = smov %s1784_s25 }
 0x22b   : > { %s2046_s25 = smov %s1788_s26  ;;  %s2047_s26 = smov %s1930_s29 }
 0x22c   : > { %s2048_s27 = smov %s1921_s21  ;;  %24 = sbr.rel (!%p22_p3) target bundleno = 9 (0x9), region = 109 }
 0x231   :  { %1030 = vsyncpa [#allocation3], 1 }
 0x232   :  { %1032 = vsyncpa [#allocation3 + $0x1], 1 }
 0x233   :  { %1033 = vsyncpa [#allocation6], 1 }
 0x234   :  { %1034 = vsyncpa [#allocation9], 1 }
 0x235   :  { %1035 = vsyncpa [#allocation4], 1 }
 0x236   :  { %1037 = vsyncpa [#allocation4 + $0x1], 1 }

</bundles_post_ra>
